<compile_context>
chip_gen: v5e
topology: v5e:2x2
jax: 0.10.0
libtpu: 0.0.40
codegen_flags: <defaults>
</compile_context>

<pallas_src>
import functools

import jax
import jax.numpy as jnp
from jax.experimental import pallas as pl
from jax.experimental.pallas import tpu as pltpu

_LANE = 128      # vreg lane width
_SUBLANE = 8     # f32 sublane width


def _round_up(v, m):
    return ((v + m - 1) // m) * m


# ------------------------- generation-aware knobs --------------------------- #

def _device_kind():
    try:
        return jax.devices()[0].device_kind.lower()
    except Exception:
        return ""


_KIND = _device_kind()
_IS_V5_OR_OLDER = any(v in _KIND for v in ("v3", "v4", "v5"))
# bf16 VALU exists on v6e/v7x; keep f32 elementwise on v5-class chips.
_BF16_ACTIVATIONS = not _IS_V5_OR_OLDER
# v7x has 64 MiB VMEM per TensorCore; v3-v6 have 128 MiB. Unknown -> conservative.
_VMEM_PHYS = (128 << 20) if any(v in _KIND for v in ("v3", "v4", "v5", "v6")) else (64 << 20)
# v5e already hits ~85% of its HBM roofline at 512-row tiles; bigger buys nothing.
_MAX_TN = 512 if _IS_V5_OR_OLDER else 1024
# Single-buffer resident weights only once they are big enough to matter.
_SINGLE_BUFFER_WEIGHT_BYTES = 8 << 20


# ----------------------------- Pallas kernel ------------------------------- #

def _make_fused_mlp_kernel(num_weights, bf16_activations):
    """Build a kernel computing relu(x@W0)...relu(@Wk-2) -> sigmoid(@Wk-1)."""

    def kernel(*refs):
        x_ref = refs[0]
        w_refs = refs[1:1 + num_weights]
        o_ref = refs[1 + num_weights]

        h = x_ref[...].astype(jnp.bfloat16)              # no-op if input is bf16
        for w_ref in w_refs[:-1]:
            y = jnp.dot(h, w_ref[...],
                        preferred_element_type=jnp.float32)   # bf16 MXU, f32 acc
            if bf16_activations:
                # v6e/v7x: bf16 VALU -> halve intermediate vld/vst traffic.
                h = jnp.maximum(y.astype(jnp.bfloat16),
                                jnp.asarray(0.0, jnp.bfloat16))
            else:
                # v5-class: ReLU in f32 (no bf16 VPU), cast only for the MXU.
                h = jnp.maximum(y, 0.0).astype(jnp.bfloat16)
            # Dropout = identity in eval mode.
        y = jnp.dot(h, w_refs[-1][...], preferred_element_type=jnp.float32)
        # Exact reciprocal keeps sigmoid strictly in [0, 1] (final layer only,
        # so the extra cost is negligible); exp rides the EUP slot.
        o_ref[...] = pl.reciprocal(1.0 + jnp.exp(-y), approx=False).astype(o_ref.dtype)

    return kernel


# ------------------------------- MLP wrapper ------------------------------- #

def init_mlp_params(key, dim_in, dim_out, dim_inner, num_layers,
                    dtype=jnp.float32):
    """Deterministic PyTorch-shaped weights: each W_i has shape [d_out, d_in]."""
    dim_inner = dim_in if dim_inner is None else dim_inner
    weights = []
    if num_layers > 1:
        d_in = dim_in
        for _ in range(num_layers - 1):
            key, sub = jax.random.split(key)
            bound = 1.0 / (d_in ** 0.5)
            weights.append(jax.random.uniform(
                sub, (dim_inner, d_in), dtype, minval=-bound, maxval=bound))
            d_in = dim_inner
        key, sub = jax.random.split(key)
        bound = 1.0 / (dim_inner ** 0.5)
        weights.append(jax.random.uniform(
            sub, (dim_out, dim_inner), dtype, minval=-bound, maxval=bound))
    else:
        key, sub = jax.random.split(key)
        bound = 1.0 / (dim_in ** 0.5)
        weights.append(jax.random.uniform(
            sub, (dim_out, dim_in), dtype, minval=-bound, maxval=bound))
    return weights


def prepare_params(weights):
    """One-time prep (outside the hot path): transpose [d_out,d_in]->[d_in,d_out],
    zero-pad both dims to 128-lane multiples, cast to bf16.

    Zero padding is exact: padded input features are 0, padded hidden units are
    ReLU(0)=0, and padded output columns are sliced off in the wrapper."""
    prepped = []
    for w in weights:
        d_out, d_in = w.shape
        wt = jnp.asarray(w).T.astype(jnp.bfloat16)
        wt = jnp.pad(wt, ((0, _round_up(d_in, _LANE) - d_in),
                          (0, _round_up(d_out, _LANE) - d_out)))
        prepped.append(wt)
    return tuple(prepped)


def _vmem_step_bytes(tn, f_pad, layer_dims, out_pad, w_bytes, w_bufs,
                     x_itemsize, out_itemsize):
    """Rough per-grid-step VMEM footprint (double-buffered I/O + live temps)."""
    x_tile = tn * f_pad * x_itemsize * 2          # double-buffered input tile
    o_tile = tn * out_pad * out_itemsize * 2      # double-buffered output tile
    widest = max(list(layer_dims) + [f_pad, out_pad])
    inter = tn * widest * 4 * 3                   # f32 accumulators / activations headroom
    return x_tile + o_tile + w_bytes * w_bufs + inter


def _weight_spec(shape, single_buffer):
    idx_map = lambda i: (0, 0)    # constant block -> VMEM-resident across grid
    if single_buffer and hasattr(pl, "Buffered"):
        try:
            return pl.BlockSpec(shape, idx_map, pipeline_mode=pl.Buffered(1))
        except TypeError:         # older BlockSpec signature: fall back to default
            pass
    return pl.BlockSpec(shape, idx_map)


@functools.partial(jax.jit, static_argnames=("dim_out", "out_dtype"))
def mlp_forward(x, prepped_weights, dim_out, out_dtype=jnp.bfloat16):
    """Fused forward pass: hidden layers = Linear+ReLU, final = Linear+Sigmoid.

    `x` may be f32 or bf16 (bf16 input halves the streamed DMA bytes)."""
    n, f = x.shape
    num_w = len(prepped_weights)

    f_pad = int(prepped_weights[0].shape[0])
    if f_pad < f:
        raise ValueError("prepared weights do not match input feature dim")
    out_pad = int(prepped_weights[-1].shape[1])
    layer_dims = [int(w.shape[1]) for w in prepped_weights]

    x_itemsize = jnp.dtype(x.dtype).itemsize
    out_itemsize = jnp.dtype(out_dtype).itemsize
    w_bytes = sum(int(w.size) * jnp.dtype(w.dtype).itemsize for w in prepped_weights)
    single_buffer_weights = w_bytes > _SINGLE_BUFFER_WEIGHT_BYTES
    w_bufs = 1 if single_buffer_weights else 2

    # ----- batch tile selection -------------------------------------------- #
    n8 = _round_up(n, _SUBLANE)
    tn = min(_MAX_TN, n8)
    # Give the batch grid >= 2 steps when the batch is big enough, so the
    # "parallel" axis can actually shard across v7x's two TensorCores.
    if n8 >= 2 * _SUBLANE:
        tn = min(tn, _round_up(-(-n8 // 2), _SUBLANE))
    # Shrink the tile until the per-step footprint fits a VMEM budget.
    vmem_budget = (_VMEM_PHYS * 2) // 5
    while tn > _SUBLANE and _vmem_step_bytes(
            tn, f_pad, layer_dims, out_pad, w_bytes, w_bufs,
            x_itemsize, out_itemsize) > vmem_budget:
        tn = max(_SUBLANE, _round_up(tn // 2, _SUBLANE))

    n_pad = _round_up(n, tn)
    x_p = jnp.pad(x, ((0, n_pad - n), (0, f_pad - f)))
    grid = (n_pad // tn,)

    step_bytes = _vmem_step_bytes(tn, f_pad, layer_dims, out_pad, w_bytes,
                                  w_bufs, x_itemsize, out_itemsize)
    vmem_limit = int(min(_VMEM_PHYS - (8 << 20),
                         max(32 << 20, 2 * step_bytes)))

    # ----- specs / cost ------------------------------------------------------ #
    in_specs = [pl.BlockSpec((tn, f_pad), lambda i: (i, 0))]
    in_specs += [_weight_spec(tuple(int(d) for d in w.shape), single_buffer_weights)
                 for w in prepped_weights]

    flops = 2 * n_pad * sum(int(w.shape[0]) * int(w.shape[1])
                            for w in prepped_weights)
    bytes_accessed = (n_pad * f_pad * x_itemsize + w_bytes
                      + n_pad * out_pad * out_itemsize)
    cost = pl.CostEstimate(flops=flops,
                           transcendentals=n_pad * out_pad,
                           bytes_accessed=bytes_accessed)

    out_p = pl.pallas_call(
        _make_fused_mlp_kernel(num_w, _BF16_ACTIVATIONS),
        out_shape=jax.ShapeDtypeStruct((n_pad, out_pad), out_dtype),
        grid=grid,
        in_specs=in_specs,
        out_specs=pl.BlockSpec((tn, out_pad), lambda i: (i, 0)),
        compiler_params=pltpu.CompilerParams(
            dimension_semantics=("parallel",),   # megacore-shard batch on v7x
            vmem_limit_bytes=vmem_limit,
        ),
        cost_estimate=cost,
    )(x_p, *prepped_weights)

    if n_pad == n and out_pad == dim_out:
        return out_p                     # no padding added -> no extra HBM pass
    return out_p[:n, :dim_out]


def mlp_reference(x, weights):
    """Pure-JAX f32 reference (PyTorch semantics) for correctness check."""
    weights = list(weights)
    h = x
    for w in weights[:-1]:
        h = jnp.maximum(h @ w.T, 0.0)
    return jax.nn.sigmoid(h @ weights[-1].T)


# ---------------------------------- main ----------------------------------- #

if __name__ == "__main__":
    # Small shapes implied by the module: a batch of feature vectors.
    N, DIM_IN, DIM_INNER, DIM_OUT = 8, 32, 32, 16
    NUM_LAYERS = 3
    DROPOUT = 0.5  # identity in eval mode

    key = jax.random.PRNGKey(0)
    kx, kw = jax.random.split(key)
    x = jax.random.normal(kx, (N, DIM_IN), jnp.float32)
    weights = init_mlp_params(kw, DIM_IN, DIM_OUT, DIM_INNER, NUM_LAYERS)

    # One-time weight prep (transpose + pad + bf16) happens outside the jit.
    prepped = prepare_params(weights)

    out = mlp_forward(x, prepped, DIM_OUT)
    out = jax.block_until_ready(out)

    ref = mlp_reference(x, weights)
    assert out.shape == (N, DIM_OUT), out.shape
    # bf16 matmul inputs + bf16 output -> loosened tolerance vs f32 reference.
    max_err = float(jnp.max(jnp.abs(out.astype(jnp.float32) - ref)))
    assert max_err < 3e-2, f"mismatch vs reference, max_abs_err={max_err}"

    print("KERNEL_OK")
</pallas_src>

<mosaic_0001>
module attributes {stable_mosaic.version = 11 : i64} {
  func.func @kernel(%arg0: i32, %arg1: memref<8x128xf32, #tpu.memory_space<vmem>>, %arg2: memref<128x128xbf16, #tpu.memory_space<vmem>>, %arg3: memref<128x128xbf16, #tpu.memory_space<vmem>>, %arg4: memref<128x128xbf16, #tpu.memory_space<vmem>>, %arg5: memref<8x128xbf16, #tpu.memory_space<vmem>>) attributes {dimension_semantics = [#tpu.dimension_semantics<parallel>], iteration_bounds = array<i64: 1>, scalar_prefetch = 0 : i64, scratch_operands = 0 : i64, tpu.core_type = #tpu.core_type<tc>, window_params = [{transform_indices = @transform_0, window_bounds = array<i64: 8, 128>}, {pipeline_mode = #tpu.pipeline_mode<synchronous>, transform_indices = @transform_1, window_bounds = array<i64: 128, 128>}, {pipeline_mode = #tpu.pipeline_mode<synchronous>, transform_indices = @transform_2, window_bounds = array<i64: 128, 128>}, {pipeline_mode = #tpu.pipeline_mode<synchronous>, transform_indices = @transform_3, window_bounds = array<i64: 128, 128>}, {transform_indices = @transform_4, window_bounds = array<i64: 8, 128>}]} {
    %c0 = arith.constant 0 : index
    %c0_0 = arith.constant 0 : index
    %0 = vector.load %arg1[%c0, %c0_0] : memref<8x128xf32, #tpu.memory_space<vmem>>, vector<8x128xf32>
    %1 = arith.truncf %0 : vector<8x128xf32> to vector<8x128xbf16>
    %c0_1 = arith.constant 0 : index
    %c0_2 = arith.constant 0 : index
    %2 = vector.load %arg2[%c0_1, %c0_2] : memref<128x128xbf16, #tpu.memory_space<vmem>>, vector<128x128xbf16>
    %cst = arith.constant dense<0.000000e+00> : vector<8x128xf32>
    %3 = tpu.matmul %1, %2, %cst {dimension_numbers = #tpu.dot_dimension_numbers<[1], [0], [0], [1], [0, 0, 1, 1], [], []>} : vector<8x128xbf16>, vector<128x128xbf16>, vector<8x128xf32> -> vector<8x128xf32>
    %4 = arith.truncf %3 : vector<8x128xf32> to vector<8x128xbf16>
    %cst_3 = arith.constant 0.000000e+00 : bf16
    %5 = vector.broadcast %cst_3 : bf16 to vector<8x128xbf16>
    %6 = arith.maximumf %4, %5 : vector<8x128xbf16>
    %c0_4 = arith.constant 0 : index
    %c0_5 = arith.constant 0 : index
    %7 = vector.load %arg3[%c0_4, %c0_5] : memref<128x128xbf16, #tpu.memory_space<vmem>>, vector<128x128xbf16>
    %cst_6 = arith.constant dense<0.000000e+00> : vector<8x128xf32>
    %8 = tpu.matmul %6, %7, %cst_6 {dimension_numbers = #tpu.dot_dimension_numbers<[1], [0], [0], [1], [0, 0, 1, 1], [], []>} : vector<8x128xbf16>, vector<128x128xbf16>, vector<8x128xf32> -> vector<8x128xf32>
    %9 = arith.truncf %8 : vector<8x128xf32> to vector<8x128xbf16>
    %cst_7 = arith.constant 0.000000e+00 : bf16
    %10 = vector.broadcast %cst_7 : bf16 to vector<8x128xbf16>
    %11 = arith.maximumf %9, %10 : vector<8x128xbf16>
    %c0_8 = arith.constant 0 : index
    %c0_9 = arith.constant 0 : index
    %12 = vector.load %arg4[%c0_8, %c0_9] : memref<128x128xbf16, #tpu.memory_space<vmem>>, vector<128x128xbf16>
    %cst_10 = arith.constant dense<0.000000e+00> : vector<8x128xf32>
    %13 = tpu.matmul %11, %12, %cst_10 {dimension_numbers = #tpu.dot_dimension_numbers<[1], [0], [0], [1], [0, 0, 1, 1], [], []>} : vector<8x128xbf16>, vector<128x128xbf16>, vector<8x128xf32> -> vector<8x128xf32>
    %cst_11 = arith.constant 0.000000e+00 : f32
    %14 = vector.broadcast %cst_11 : f32 to vector<8x128xf32>
    %15 = arith.subf %14, %13 : vector<8x128xf32>
    %16 = math.exp %15 : vector<8x128xf32>
    %cst_12 = arith.constant 1.000000e+00 : f32
    %17 = vector.broadcast %cst_12 : f32 to vector<8x128xf32>
    %18 = arith.addf %17, %16 : vector<8x128xf32>
    %19 = tpu.reciprocal %18 : vector<8x128xf32> -> vector<8x128xf32>
    %20 = arith.truncf %19 : vector<8x128xf32> to vector<8x128xbf16>
    %c0_13 = arith.constant 0 : index
    %c0_14 = arith.constant 0 : index
    %21 = vector.load %arg5[%c0_13, %c0_14] : memref<8x128xbf16, #tpu.memory_space<vmem>>, vector<8x128xbf16>
    tpu.vector_store %arg5[%c0_13, %c0_14], %20 {strides = array<i32>} : memref<8x128xbf16, #tpu.memory_space<vmem>>, vector<8x128xbf16>,
    return
  }
  func.func @transform_0(%arg0: i32) -> (i32, i32) {
    %c0_i32 = arith.constant 0 : i32
    %c0_i32_0 = arith.constant 0 : i32
    return %arg0, %c0_i32 : i32, i32
  }
  func.func @transform_1(%arg0: i32) -> (i32, i32) {
    %c0_i32 = arith.constant 0 : i32
    %c0_i32_0 = arith.constant 0 : i32
    %c0_i32_1 = arith.constant 0 : i32
    return %c0_i32, %c0_i32_0 : i32, i32
  }
  func.func @transform_2(%arg0: i32) -> (i32, i32) {
    %c0_i32 = arith.constant 0 : i32
    %c0_i32_0 = arith.constant 0 : i32
    %c0_i32_1 = arith.constant 0 : i32
    return %c0_i32, %c0_i32_0 : i32, i32
  }
  func.func @transform_3(%arg0: i32) -> (i32, i32) {
    %c0_i32 = arith.constant 0 : i32
    %c0_i32_0 = arith.constant 0 : i32
    %c0_i32_1 = arith.constant 0 : i32
    return %c0_i32, %c0_i32_0 : i32, i32
  }
  func.func @transform_4(%arg0: i32) -> (i32, i32) {
    %c0_i32 = arith.constant 0 : i32
    %c0_i32_0 = arith.constant 0 : i32
    return %arg0, %c0_i32 : i32, i32
  }
}

</mosaic_0001>

<bundles_post_ra>
// kernel: mlp_forward.1
= control target key start
LH: loop header
LB: loop body
LE: loop exit
PB: predicated region body
PF: predicated region fallthrough
CT: control target
= control target key end

     0   :  { %9 = vsyncpa [#allocation3], 0  ;;  %s622_s0 = inlined_call_operand.vmem [shape: f32[8,128], index: 0, kind: input, shape index: {}]   ;;  %s623_s1 = inlined_call_operand.hbm [shape: bf16[128,128], index: 1, kind: input, shape index: {}]   ;;  %s624_s2 = inlined_call_operand.hbm [shape: bf16[128,128], index: 2, kind: input, shape index: {}]   ;;  %s625_s3 = inlined_call_operand.hbm [shape: bf16[128,128], index: 3, kind: input, shape index: {}]   ;;  %s626_s4 = inlined_call_operand.hbm [shape: bf16[8,128], index: 4, kind: output, shape index: {}]  }
   0x1   :  { %10 = vsyncpa [#allocation6], 0 }
   0x2   :  { %11 = vsyncpa [#allocation4], 0  ;;  %s31_s17 = sshll.u32 %s624_s2, 4  ;;  %s576_s18 = smov [#allocation5]   ;;  %s32_s17 = int_to_ptr.hbm [resolvable:$true] %s31_s17 }
   0x3   :  { %s33_s19 = sshll.u32 %s576_s18, 4  ;;  %s18_s22 = sshll.u32 %s623_s1, 4  ;;  %s34_s19 = int_to_ptr.vmem [resolvable:$true] %s33_s19  ;;  %s19_s22 = int_to_ptr.hbm [resolvable:$true] %s18_s22 }
   0x4   :  { %s577_s23 = smov 64   ;;  %s578_s24 = smov 4  }
   0x5   :  { %39 = dma.hbm_to_vmem [thread:$0]  %s32_s17, 1024, %s34_s19, [#allocation6], %s577_s23, %s577_s23, %s578_s24  }
   0x6   :  { %s579_s25 = smov [#allocation2]   ;;  %s44_s29 = sshll.u32 %s625_s3, 4  ;;  %s45_s29 = int_to_ptr.hbm [resolvable:$true] %s44_s29 }
   0x7   :  { %s20_s26 = sshll.u32 %s579_s25, 4  ;;  %s580_s2 = smov [#allocation7]   ;;  %s21_s26 = int_to_ptr.vmem [resolvable:$true] %s20_s26 }
   0x8   :  { %26 = dma.hbm_to_vmem [thread:$0]  %s19_s22, 1024, %s21_s26, [#allocation3], %s577_s23, %s577_s23, %s578_s24  }
   0x9   :  { %s46_s30 = sshll.u32 %s580_s2, 4  ;;  %s47_s30 = int_to_ptr.vmem [resolvable:$true] %s46_s30 }
   0xa   :  { %52 = dma.hbm_to_vmem [thread:$0]  %s45_s29, 1024, %s47_s30, [#allocation6], %s577_s23, %s577_s23, %s578_s24  }
   0xb   :  { %570 = dma.done.wait [#allocation3], 1024  }
   0xc   :  { %571 = vsyncadd [#allocation3], 4294966272 }
   0xd   :  { %572 = dma.done.wait [#allocation6], 2048  }
   0xe   :  { %573 = vsyncadd [#allocation6], 4294965248  ;;  %v447_v0 = vld [vmem:[#allocation2 + $0x38] sm:$0xff]  ;;  %v446_v1 = vld [vmem:[#allocation2 + $0x30] sm:$0xff]  ;;  %s333_s8 = sshll.u32 %s626_s4, 4  ;;  %s334_s8 = int_to_ptr.hbm [resolvable:$true] %s333_s8 }
   0xf   :  { %131 = vmatpush.bf16.msra.mxu0 %v447_v0  ;;  %v455_v2 = vld [vmem:[#allocation5 + $0x38] sm:$0xff]  ;;  %v454_v3 = vld [vmem:[#allocation5 + $0x30] sm:$0xff]  ;;  %v445_v4 = vld [vmem:[#allocation2 + $0x28] sm:$0xff] }
  0x10   :  { %212 = vmatpush.bf16.msra.mxu1 %v455_v2  ;;  %v453_v5 = vld [vmem:[#allocation5 + $0x28] sm:$0xff]  ;;  %v444_v6 = vld [vmem:[#allocation2 + $0x20] sm:$0xff]  ;;  %v443_v8 = vld [vmem:[#allocation2 + $0x18] sm:$0xff] }
  0x11   :  { %v452_v7 = vld [vmem:[#allocation5 + $0x20] sm:$0xff]  ;;  %v451_v9 = vld [vmem:[#allocation5 + $0x18] sm:$0xff]  ;;  %v442_v10 = vld [vmem:[#allocation2 + $0x10] sm:$0xff] }
  0x12   :  { %v450_v11 = vld [vmem:[#allocation5 + $0x10] sm:$0xff]  ;;  %v441_v12 = vld [vmem:[#allocation2 + $0x8] sm:$0xff]  ;;  %v440_v14 = vld [vmem:[#allocation2] sm:$0xff] }
  0x13   :  { %132 = vmatpush.bf16.msra.mxu0 %v446_v1  ;;  %v449_v13 = vld [vmem:[#allocation5 + $0x8] sm:$0xff]  ;;  %v65_v15 = vld [vmem:[%s622_s0] sm:$0xff]  ;;  %v463_v18 = vld [vmem:[#allocation7 + $0x38] sm:$0xff]  ;;  %s581_s0 = smov [#allocation8]  }
  0x14   :  { %213 = vmatpush.bf16.msra.mxu1 %v454_v3  ;;  %v66_v16 = vpack.c.bf16 %v65_v15, %v65_v15  ;;  %v448_v17 = vld [vmem:[#allocation5] sm:$0xff]  ;;  %293 = vmatpush.bf16.msra.mxu2 %v463_v18  ;;  %v462_v19 = vld [vmem:[#allocation7 + $0x30] sm:$0xff]  ;;  %v461_v20 = vld [vmem:[#allocation7 + $0x28] sm:$0xff]  ;;  %s331_s5 = sshll.u32 %s581_s0, 4  ;;  %s332_s5 = int_to_ptr.vmem [resolvable:$true] %s331_s5 }
  0x15   :  { %v460_v21 = vld [vmem:[#allocation7 + $0x20] sm:$0xff]  ;;  %v459_v22 = vld [vmem:[#allocation7 + $0x18] sm:$0xff]  ;;  %v458_v23 = vld [vmem:[#allocation7 + $0x10] sm:$0xff] }
  0x16   :  { %v457_v24 = vld [vmem:[#allocation7 + $0x8] sm:$0xff]  ;;  %v456_v29 = vld [vmem:[#allocation7] sm:$0xff] }
  0x17   :  { %133 = vmatpush.bf16.msra.mxu0 %v445_v4 }
  0x18   :  { %214 = vmatpush.bf16.msra.mxu1 %v453_v5  ;;  %294 = vmatpush.bf16.msra.mxu2 %v462_v19 }
  0x1b   :  { %134 = vmatpush.bf16.msra.mxu0 %v444_v6 }
  0x1c   :  { %215 = vmatpush.bf16.msra.mxu1 %v452_v7  ;;  %295 = vmatpush.bf16.msra.mxu2 %v461_v20 }
  0x1f   :  { %135 = vmatpush.bf16.msra.mxu0 %v443_v8 }
  0x20   :  { %216 = vmatpush.bf16.msra.mxu1 %v451_v9  ;;  %296 = vmatpush.bf16.msra.mxu2 %v460_v21 }
  0x23   :  { %136 = vmatpush.bf16.msra.mxu0 %v442_v10 }
  0x24   :  { %217 = vmatpush.bf16.msra.mxu1 %v450_v11  ;;  %297 = vmatpush.bf16.msra.mxu2 %v459_v22 }
  0x27   :  { %137 = vmatpush.bf16.msra.mxu0 %v441_v12 }
  0x28   :  { %218 = vmatpush.bf16.msra.mxu1 %v449_v13  ;;  %298 = vmatpush.bf16.msra.mxu2 %v458_v23 }
  0x2b   :  { %138 = vmatpush.bf16.msra.mxu0 %v440_v14 }
  0x2c   :  { %219 = vmatpush.bf16.msra.mxu1 %v448_v17  ;;  %299 = vmatpush.bf16.msra.mxu2 %v457_v24 }
  0x2e   :  { %139 = vmatmul.bf16.vlgmr.msra.gmra.mxu0 %v66_v16 }
  0x30   :  { %300 = vmatpush.bf16.msra.mxu2 %v456_v29 }
  0xab   :  { %v140_v25 = vpop.f32.mrf.mxu0 }
  0xac   :  { %v146_v26 = vmax.f32 %v140_v25, 0.0 }
  0xae   :  { %v147_v27 = vpack.c.bf16 %v146_v26, %v146_v26 }
  0xb0   :  { %220 = vmatmul.bf16.vlgmr.msra.gmra.mxu1 %v147_v27 }
  0xb3   :  { %v142_v28 = vpop.f32.mrf.mxu0 }
 0x12d   :  { %v221_v30 = vpop.f32.mrf.mxu1 }
 0x12e   :  { %v227_v31 = vmax.f32 %v221_v30, 0.0 }
 0x130   :  { %v228_v32 = vpack.c.bf16 %v227_v31, %v227_v31 }
 0x132   :  { %301 = vmatmul.bf16.vlgmr.msra.gmra.mxu2 %v228_v32 }
 0x135   :  { %v223_v33 = vpop.f32.mrf.mxu1 }
 0x1b5   :  { %v302_v34 = vpop.f32.mrf.mxu2 }
 0x1b6   :  { %v306_v35 = vsub.f32 0.0, %v302_v34 }
 0x1b8   :  { %v307_v36 = vmul.f32 1.442695, %v306_v35 }
 0x1ba   :  { %470 = vpow2.f32 %v307_v36 }
 0x1bd   :  { %v304_v37 = vpop.f32.mrf.mxu2 }
 0x1c0   :  { %v471_v38 = vpop.eup %470 }
 0x1c1   :  { %v309_v39 = vadd.f32 1.0, %v471_v38 }
 0x1c3   :  { %472 = vrcp.f32 %v309_v39  ;;  %v321_v43 = vand.u32 2147483648, %v309_v39  ;;  %v319_v45 = vand.u32 2147483647, %v309_v39  ;;  %vm315_vm1 = vweird.f32 %v309_v39 }
 0x1c5   :  { %v322_v47 = vor.u32 1.1754944e-38, %v321_v43  ;;  %vm320_vm3 = vcmp.eq.f32.partialorder %v319_v45, 8.507059e+37 }
 0x1c9   :  { %v473_v40 = vpop.eup %472 }
 0x1ca   :  { %v311_v41 = vmul.f32 %v473_v40, %v309_v39  ;;  %vm316_vm0 = vweird.f32 %v473_v40 }
 0x1cb   :  { %vm317_vm2 = vmor %vm315_vm1, %vm316_vm0 }
 0x1cc   :  { %v312_v42 = vsub.f32 1.0, %v311_v41 }
 0x1ce   :  { %v313_v44 = vmul.f32 %v473_v40, %v312_v42 }
 0x1d0   :  { %v314_v46 = vadd.f32 %v473_v40, %v313_v44 }
 0x1d2   :  { %v318_v48 = vsel %vm317_vm2, %v473_v40, %v314_v46 }
 0x1d3   :  { %v323_v49 = vsel %vm320_vm3, %v322_v47, %v318_v48 }
 0x1d4   :  { %v324_v50 = vpack.c.bf16 %v323_v49, %v323_v49 }
 0x1d6   :  { %325 = vst [vmem:[#allocation8] sm:$0xf] %v324_v50 }
 0x1d7   :  { %336 = dma.vmem_to_hbm [thread:$0]  %s332_s5, 64, %s334_s8, [#allocation4]  }
 0x1d8   :  { %574 = dma.done.wait [#allocation4], 64  }
 0x1d9   :  { %575 = vsyncadd [#allocation4], 4294967232 }
 0x1da   :  { %341 = vsyncpa [#allocation3], 1 }
 0x1db   :  { %342 = vsyncpa [#allocation6], 1 }
 0x1dc   :  { %343 = vsyncpa [#allocation4], 1 }

</bundles_post_ra>
